<compile_context>
chip_gen: v6e
topology: v6e:2x2x1
jax: 0.10.0
libtpu: 0.0.40
codegen_flags: <defaults>
</compile_context>

<pallas_src>
import jax
import jax.numpy as jnp
from jax import lax
from jax.experimental import pallas as pl
from jax.experimental.pallas import tpu as pltpu


def _attention_kernel(x_ref, wqkv_ref, wproj_ref, bias_ref, o_ref):
    """Fused attention forward for ONE batch element.

    x_ref:     (1, N, C)      activations (f32)
    wqkv_ref:  (3, H, C, dh)  head-major QKV weight (bf16); softmax scale is
                              already folded into wqkv_ref[0] (the Q slab)
    wproj_ref: (H, dh, C)     head-major output-projection weight (bf16)
    bias_ref:  (1, C)         output-projection bias (f32)
    o_ref:     (1, N, C)      output
    """
    _, H, C, dh = wqkv_ref.shape
    x = x_ref[0]                                    # (N, C)
    N = x.shape[0]
    mm_dtype = wqkv_ref.dtype                       # matmul operand dtype (bf16)

    # Heads on a leading batch axis -> no dh-wide lane slicing anywhere.
    xb = jnp.broadcast_to(x.astype(mm_dtype), (H, N, C))
    w = wqkv_ref[...]                               # (3, H, C, dh)

    # Head-batched projections: contract C, batch over heads.  f32 accumulate.
    dn_proj = (((2,), (1,)), ((0,), (0,)))
    q = lax.dot_general(xb, w[0], dn_proj, preferred_element_type=jnp.float32)  # (H,N,dh), pre-scaled
    k = lax.dot_general(xb, w[1], dn_proj, preferred_element_type=jnp.float32)  # (H,N,dh)
    v = lax.dot_general(xb, w[2], dn_proj, preferred_element_type=jnp.float32)  # (H,N,dh)

    # Scores (H, N, N); softmax math stays in f32.
    dn_qk = (((2,), (2,)), ((0,), (0,)))
    s = lax.dot_general(q.astype(mm_dtype), k.astype(mm_dtype), dn_qk,
                        preferred_element_type=jnp.float32)
    # TODO(synk): optional `mask` (masked_fill with -inf) and attn_dropout are
    # not implemented (call site uses mask=None, eval mode / rate 0.0).
    s = s - jnp.max(s, axis=-1, keepdims=True)
    p = jnp.exp(s)                                   # EUP
    denom = jnp.sum(p, axis=-1, keepdims=True)       # (H, N, 1)

    # Unnormalized PV matmul, then normalize the small (H, N, dh) result with
    # an EUP reciprocal instead of dividing the (H, N, N) probability matrix.
    dn_pv = (((2,), (1,)), ((0,), (0,)))
    ctx = lax.dot_general(p.astype(mm_dtype), v.astype(mm_dtype), dn_pv,
                          preferred_element_type=jnp.float32)        # (H, N, dh)
    ctx = ctx * pl.reciprocal(denom, approx=True)

    # Per-head output projection, reduced over heads (replaces the lane concat).
    out_h = lax.dot_general(ctx.astype(mm_dtype), wproj_ref[...], dn_pv,
                            preferred_element_type=jnp.float32)      # (H, N, C)
    out = jnp.sum(out_h, axis=0) + bias_ref[...]                     # (N, C)
    # TODO(synk): proj_dropout is identity at rate 0.0 / eval.
    o_ref[0] = out.astype(o_ref.dtype)


def attention_forward(x, w_qkv, w_proj, b_proj, *, num_heads,
                      matmul_dtype=jnp.bfloat16):
    """Fused attention forward.

    x:      (B, N, C)
    w_qkv:  (3C, C)  PyTorch nn.Linear weight layout (out_features, in_features)
    w_proj: (C, C)   PyTorch nn.Linear weight layout (out_features, in_features)
    b_proj: (C,)
    """
    B, N, C = x.shape
    H = num_heads
    assert C % H == 0, "dim_emb must be divisible by num_heads"
    dh = C // H
    assert w_qkv.shape == (3 * C, C), f"expected (3C, C) qkv weight, got {w_qkv.shape}"
    assert w_proj.shape == (C, C), f"expected (C, C) proj weight, got {w_proj.shape}"
    assert b_proj.shape == (C,), f"expected (C,) proj bias, got {b_proj.shape}"
    scale = dh ** (-0.5)

    # One-time weight prep (in practice do this at parameter-load time):
    #  * explicit transpose out of the PyTorch (out, in) layout,
    #  * heads exposed as a leading axis (no lane slicing in the kernel),
    #  * softmax scale folded into W_q,
    #  * bf16 matmul operands (f32 accumulation requested inside the kernel).
    w_qkv_heads = w_qkv.astype(jnp.float32).reshape(3, H, dh, C).transpose(0, 1, 3, 2)
    w_qkv_heads = w_qkv_heads * jnp.array([scale, 1.0, 1.0], jnp.float32).reshape(3, 1, 1, 1)
    w_qkv_heads = w_qkv_heads.astype(matmul_dtype)                       # (3, H, C, dh)
    w_proj_heads = w_proj.astype(jnp.float32).T.reshape(H, dh, C).astype(matmul_dtype)  # (H, dh, C)
    bias = b_proj.astype(jnp.float32).reshape(1, C)

    return pl.pallas_call(
        _attention_kernel,
        out_shape=jax.ShapeDtypeStruct((B, N, C), x.dtype),
        grid_spec=pltpu.PrefetchScalarGridSpec(
            num_scalar_prefetch=0,
            # One batch element per grid step keeps the grid length >= 2 so the
            # v7x megacore can split batches across both TensorCores (no-op on
            # v5e/v6e).  For large B, fold several batch elements per step.
            grid=(B,),
            in_specs=[
                pl.BlockSpec((1, N, C), lambda b: (b, 0, 0)),         # x (per batch)
                pl.BlockSpec((3, H, C, dh), lambda b: (0, 0, 0, 0)),  # qkv weight (resident)
                pl.BlockSpec((H, dh, C), lambda b: (0, 0, 0)),        # proj weight (resident)
                pl.BlockSpec((1, C), lambda b: (0, 0)),               # proj bias (resident)
            ],
            out_specs=pl.BlockSpec((1, N, C), lambda b: (b, 0, 0)),
        ),
        compiler_params=pltpu.CompilerParams(
            dimension_semantics=("parallel",),
            # Explicit VMEM budget with headroom (v7x has only 64 MiB per TC);
            # resident bf16 weights + double-buffered x/out are << 1 MiB here.
            vmem_limit_bytes=32 * 1024 * 1024,
        ),
    )(x, w_qkv_heads, w_proj_heads, bias)


def _reference(x, w_qkv, w_proj, b_proj, num_heads):
    # Pure-JAX f32 mirror of the PyTorch forward (eval, mask=None, dropout=0),
    # consuming weights in the PyTorch (out_features, in_features) layout.
    B, N, C = x.shape
    dh = C // num_heads
    scale = dh ** (-0.5)
    qkv = x @ w_qkv.T                                               # (B, N, 3C)
    qkv = qkv.reshape(B, N, 3, num_heads, dh).transpose(2, 0, 3, 1, 4)
    q, k, v = qkv[0], qkv[1], qkv[2]                                # (B, H, N, dh)
    attn = jnp.einsum("bhnd,bhmd->bhnm", q, k) * scale
    attn = jax.nn.softmax(attn, axis=-1)
    out = jnp.einsum("bhnm,bhmd->bhnd", attn, v)                    # (B, H, N, dh)
    out = out.transpose(0, 2, 1, 3).reshape(B, N, C)
    return out @ w_proj.T + b_proj


if __name__ == "__main__":
    key = jax.random.PRNGKey(0)
    B, N, C, H = 2, 8, 32, 8
    k1, k2, k3, k4 = jax.random.split(key, 4)

    x = jax.random.normal(k1, (B, N, C), dtype=jnp.float32)
    # PyTorch nn.Linear weight layouts: (out_features, in_features).
    w_qkv = jax.random.normal(k2, (3 * C, C), dtype=jnp.float32) * 0.1
    w_proj = jax.random.normal(k3, (C, C), dtype=jnp.float32) * 0.1
    b_proj = jax.random.normal(k4, (C,), dtype=jnp.float32) * 0.1

    out = attention_forward(x, w_qkv, w_proj, b_proj, num_heads=H)
    out = jax.block_until_ready(out)
    assert out.shape == (B, N, C), out.shape

    ref = _reference(x, w_qkv, w_proj, b_proj, H)
    max_err = float(jnp.max(jnp.abs(out - ref)))
    # bf16 matmul operands + approx reciprocal => bf16-level tolerance vs the
    # f32 reference (observed errors are ~1e-2 at these magnitudes).
    assert max_err < 6e-2, f"mismatch vs reference (max abs err {max_err})"

    print("KERNEL_OK")
</pallas_src>

<mosaic_0001>
module attributes {stable_mosaic.version = 11 : i64} {
  func.func @_attention_kernel(%arg0: i32, %arg1: memref<1x8x32xf32, #tpu.memory_space<vmem>>, %arg2: memref<3x8x32x4xbf16, #tpu.memory_space<vmem>>, %arg3: memref<8x4x32xbf16, #tpu.memory_space<vmem>>, %arg4: memref<1x32xf32, #tpu.memory_space<vmem>>, %arg5: memref<1x8x32xf32, #tpu.memory_space<vmem>>) attributes {dimension_semantics = [#tpu.dimension_semantics<parallel>], iteration_bounds = array<i64: 2>, scalar_prefetch = 0 : i64, scratch_operands = 0 : i64, tpu.core_type = #tpu.core_type<tc>, window_params = [{transform_indices = @transform_0, window_bounds = array<i64: 1, 8, 32>}, {pipeline_mode = #tpu.pipeline_mode<synchronous>, transform_indices = @transform_1, window_bounds = array<i64: 3, 8, 32, 4>}, {pipeline_mode = #tpu.pipeline_mode<synchronous>, transform_indices = @transform_2, window_bounds = array<i64: 8, 4, 32>}, {pipeline_mode = #tpu.pipeline_mode<synchronous>, transform_indices = @transform_3, window_bounds = array<i64: 1, 32>}, {transform_indices = @transform_4, window_bounds = array<i64: 1, 8, 32>}]} {
    %c0 = arith.constant 0 : index
    %c0_0 = arith.constant 0 : index
    %c0_1 = arith.constant 0 : index
    %0 = vector.load %arg1[%c0, %c0_0, %c0_1] : memref<1x8x32xf32, #tpu.memory_space<vmem>>, vector<1x8x32xf32>
    %1 = vector.shape_cast %0 : vector<1x8x32xf32> to vector<8x32xf32>
    %2 = arith.truncf %1 : vector<8x32xf32> to vector<8x32xbf16>
    %3 = vector.shape_cast %2 : vector<8x32xbf16> to vector<1x8x32xbf16>
    %4 = vector.broadcast %3 : vector<1x8x32xbf16> to vector<8x8x32xbf16>
    %c0_2 = arith.constant 0 : index
    %c0_3 = arith.constant 0 : index
    %c0_4 = arith.constant 0 : index
    %c0_5 = arith.constant 0 : index
    %5 = vector.load %arg2[%c0_2, %c0_3, %c0_4, %c0_5] : memref<3x8x32x4xbf16, #tpu.memory_space<vmem>>, vector<3x8x32x4xbf16>
    %6 = vector.extract_strided_slice %5 {offsets = [0, 0, 0, 0], sizes = [1, 8, 32, 4], strides = [1, 1, 1, 1]} : vector<3x8x32x4xbf16> to vector<1x8x32x4xbf16>
    %7 = vector.shape_cast %6 : vector<1x8x32x4xbf16> to vector<8x32x4xbf16>
    %cst = arith.constant dense<0.000000e+00> : vector<8x8x4xf32>
    %8 = tpu.matmul %4, %7, %cst {dimension_numbers = #tpu.dot_dimension_numbers<[2], [1], [1], [2], [0, 0, 0, 1, 1, 2], [0], [0]>} : vector<8x8x32xbf16>, vector<8x32x4xbf16>, vector<8x8x4xf32> -> vector<8x8x4xf32>
    %9 = vector.extract_strided_slice %5 {offsets = [1, 0, 0, 0], sizes = [1, 8, 32, 4], strides = [1, 1, 1, 1]} : vector<3x8x32x4xbf16> to vector<1x8x32x4xbf16>
    %10 = vector.shape_cast %9 : vector<1x8x32x4xbf16> to vector<8x32x4xbf16>
    %cst_6 = arith.constant dense<0.000000e+00> : vector<8x8x4xf32>
    %11 = tpu.matmul %4, %10, %cst_6 {dimension_numbers = #tpu.dot_dimension_numbers<[2], [1], [1], [2], [0, 0, 0, 1, 1, 2], [0], [0]>} : vector<8x8x32xbf16>, vector<8x32x4xbf16>, vector<8x8x4xf32> -> vector<8x8x4xf32>
    %12 = vector.extract_strided_slice %5 {offsets = [2, 0, 0, 0], sizes = [1, 8, 32, 4], strides = [1, 1, 1, 1]} : vector<3x8x32x4xbf16> to vector<1x8x32x4xbf16>
    %13 = vector.shape_cast %12 : vector<1x8x32x4xbf16> to vector<8x32x4xbf16>
    %cst_7 = arith.constant dense<0.000000e+00> : vector<8x8x4xf32>
    %14 = tpu.matmul %4, %13, %cst_7 {dimension_numbers = #tpu.dot_dimension_numbers<[2], [1], [1], [2], [0, 0, 0, 1, 1, 2], [0], [0]>} : vector<8x8x32xbf16>, vector<8x32x4xbf16>, vector<8x8x4xf32> -> vector<8x8x4xf32>
    %15 = arith.truncf %8 : vector<8x8x4xf32> to vector<8x8x4xbf16>
    %16 = arith.truncf %11 : vector<8x8x4xf32> to vector<8x8x4xbf16>
    %cst_8 = arith.constant dense<0.000000e+00> : vector<8x8x8xf32>
    %17 = tpu.matmul %15, %16, %cst_8 {dimension_numbers = #tpu.dot_dimension_numbers<[2], [2], [1], [1], [0, 0, 0, 1, 1, 1], [0], [0]>} : vector<8x8x4xbf16>, vector<8x8x4xbf16>, vector<8x8x8xf32> -> vector<8x8x8xf32>
    %cst_9 = arith.constant dense<0xFF800000> : vector<8x8xf32>
    %18 = vector.multi_reduction <maximumf>, %17, %cst_9 [2] : vector<8x8x8xf32> to vector<8x8xf32>
    %19 = vector.shape_cast %18 : vector<8x8xf32> to vector<8x8x1xf32>
    %20 = vector.broadcast %19 : vector<8x8x1xf32> to vector<8x8x8xf32>
    %21 = arith.subf %17, %20 : vector<8x8x8xf32>
    %22 = math.exp %21 : vector<8x8x8xf32>
    %cst_10 = arith.constant dense<0.000000e+00> : vector<8x8xf32>
    %23 = vector.multi_reduction <add>, %22, %cst_10 [2] : vector<8x8x8xf32> to vector<8x8xf32>
    %24 = vector.shape_cast %23 : vector<8x8xf32> to vector<8x8x1xf32>
    %25 = arith.truncf %22 : vector<8x8x8xf32> to vector<8x8x8xbf16>
    %26 = arith.truncf %14 : vector<8x8x4xf32> to vector<8x8x4xbf16>
    %cst_11 = arith.constant dense<0.000000e+00> : vector<8x8x4xf32>
    %27 = tpu.matmul %25, %26, %cst_11 {dimension_numbers = #tpu.dot_dimension_numbers<[2], [1], [1], [2], [0, 0, 0, 1, 1, 2], [0], [0]>} : vector<8x8x8xbf16>, vector<8x8x4xbf16>, vector<8x8x4xf32> -> vector<8x8x4xf32>
    %28 = tpu.reciprocal %24 {approx = true} : vector<8x8x1xf32> -> vector<8x8x1xf32>
    %29 = vector.broadcast %28 : vector<8x8x1xf32> to vector<8x8x4xf32>
    %30 = arith.mulf %27, %29 : vector<8x8x4xf32>
    %31 = arith.truncf %30 : vector<8x8x4xf32> to vector<8x8x4xbf16>
    %c0_12 = arith.constant 0 : index
    %c0_13 = arith.constant 0 : index
    %c0_14 = arith.constant 0 : index
    %32 = vector.load %arg3[%c0_12, %c0_13, %c0_14] : memref<8x4x32xbf16, #tpu.memory_space<vmem>>, vector<8x4x32xbf16>
    %cst_15 = arith.constant dense<0.000000e+00> : vector<8x8x32xf32>
    %33 = tpu.matmul %31, %32, %cst_15 {dimension_numbers = #tpu.dot_dimension_numbers<[2], [1], [1], [2], [0, 0, 0, 1, 1, 2], [0], [0]>} : vector<8x8x4xbf16>, vector<8x4x32xbf16>, vector<8x8x32xf32> -> vector<8x8x32xf32>
    %cst_16 = arith.constant dense<0.000000e+00> : vector<8x32xf32>
    %34 = vector.multi_reduction <add>, %33, %cst_16 [0] : vector<8x8x32xf32> to vector<8x32xf32>
    %c0_17 = arith.constant 0 : index
    %c0_18 = arith.constant 0 : index
    %35 = vector.load %arg4[%c0_17, %c0_18] : memref<1x32xf32, #tpu.memory_space<vmem>>, vector<1x32xf32>
    %36 = vector.broadcast %35 : vector<1x32xf32> to vector<8x32xf32>
    %37 = arith.addf %34, %36 : vector<8x32xf32>
    %c0_19 = arith.constant 0 : index
    %c0_20 = arith.constant 0 : index
    %c0_21 = arith.constant 0 : index
    %38 = vector.load %arg5[%c0_19, %c0_20, %c0_21] : memref<1x8x32xf32, #tpu.memory_space<vmem>>, vector<1x8x32xf32>
    %39 = vector.shape_cast %38 : vector<1x8x32xf32> to vector<8x32xf32>
    %40 = vector.shape_cast %37 : vector<8x32xf32> to vector<1x8x32xf32>
    tpu.vector_store %arg5[%c0_19, %c0_20, %c0_21], %40 {strides = array<i32>} : memref<1x8x32xf32, #tpu.memory_space<vmem>>, vector<1x8x32xf32>,
    return
  }
  func.func @transform_0(%arg0: i32) -> (i32, i32, i32) {
    %c0_i32 = arith.constant 0 : i32
    %c0_i32_0 = arith.constant 0 : i32
    %c0_i32_1 = arith.constant 0 : i32
    return %arg0, %c0_i32, %c0_i32_0 : i32, i32, i32
  }
  func.func @transform_1(%arg0: i32) -> (i32, i32, i32, i32) {
    %c0_i32 = arith.constant 0 : i32
    %c0_i32_0 = arith.constant 0 : i32
    %c0_i32_1 = arith.constant 0 : i32
    %c0_i32_2 = arith.constant 0 : i32
    %c0_i32_3 = arith.constant 0 : i32
    return %c0_i32, %c0_i32_0, %c0_i32_1, %c0_i32_2 : i32, i32, i32, i32
  }
  func.func @transform_2(%arg0: i32) -> (i32, i32, i32) {
    %c0_i32 = arith.constant 0 : i32
    %c0_i32_0 = arith.constant 0 : i32
    %c0_i32_1 = arith.constant 0 : i32
    %c0_i32_2 = arith.constant 0 : i32
    return %c0_i32, %c0_i32_0, %c0_i32_1 : i32, i32, i32
  }
  func.func @transform_3(%arg0: i32) -> (i32, i32) {
    %c0_i32 = arith.constant 0 : i32
    %c0_i32_0 = arith.constant 0 : i32
    %c0_i32_1 = arith.constant 0 : i32
    return %c0_i32, %c0_i32_0 : i32, i32
  }
  func.func @transform_4(%arg0: i32) -> (i32, i32, i32) {
    %c0_i32 = arith.constant 0 : i32
    %c0_i32_0 = arith.constant 0 : i32
    %c0_i32_1 = arith.constant 0 : i32
    return %arg0, %c0_i32, %c0_i32_0 : i32, i32, i32
  }
}

</mosaic_0001>

<bundles_post_ra>
// kernel: tpu_custom_call.1
= control target key start
LH: loop header
LB: loop body
LE: loop exit
PB: predicated region body
PF: predicated region fallthrough
CT: control target
= control target key end

     0   :  { %9 = vsyncpa [#allocation3], 0  ;;  %s4260_s0 = inlined_call_operand.vmem [shape: f32[2,8,32], index: 0, kind: input, shape index: {}]   ;;  %s4261_s1 = inlined_call_operand.vmem [shape: bf16[3,8,32,4], index: 1, kind: input, shape index: {}]   ;;  %s4262_s2 = inlined_call_operand.vmem [shape: bf16[8,4,32], index: 2, kind: input, shape index: {}]   ;;  %s4263_s3 = inlined_call_operand.vmem [shape: f32[1,32], index: 3, kind: input, shape index: {}]   ;;  %s4264_s4 = inlined_call_operand.hbm [shape: f32[2,8,32], index: 4, kind: output, shape index: {}]  }
   0x1   :  { %11 = vsyncpa [#allocation3 + $0x1], 0  ;;  %s3659_s15 = smov 0   ;;  %s3661_s16 = smov 0  }
   0x2   :  { %s3663_s17 = smov 0   ;;  %s3665_s18 = smov 0  }
   0x3 LB: > { %s3680_s19 = sadd.s32 4294967295, %s3629_s18   ;;  %s2885_s20 = sadd.s32 4294967294, %s3629_s18   ;;  %s3629_s18 = sphi %s3665_s18, %s4270_s18   ;;  %s3625_s17 = sphi %s3663_s17, %s4269_s17   ;;  %s3621_s16 = sphi %s3661_s16, %s4268_s16   ;;  %s3617_s15 = sphi %s3659_s15, %s4267_s15  }
   0x4   : > { %s3684_s21 = sadd.s32 1, %s3629_s18   ;;  %s113_s22 = sadd.s32 1, %s3625_s17 }
   0x5   : > { %s110_s23 = ssub.s32 %s3629_s18, %s3684_s21  ;;  %p123_p0 = scmp.ne.s32.totalorder %s3625_s17, %s3621_s16 }
   0x6   : > { %p111_p1 = scmp.eq.s32.totalorder %s110_s23, 0  ;;  %p124_p2 = scmp.eq.s32.totalorder %s3680_s19, 1 }
   0x7   : > { %p129_p3 = scmp.ne.s32.totalorder %s3621_s16, %s3617_s15  ;;  %p130_p4 = scmp.eq.s32.totalorder %s2885_s20, 1 }
   0x8   : > { %s3695_s24 = scalar_select %p111_p1, %s3625_s17, %s113_s22  }
   0x9   : > { %p3697_p5 = por %p124_p2, %p123_p0  ;;  %p3701_p6 = por %p130_p4, %p129_p3 }
   0xa   : > { %p2888_p7 = scmp.ge.s32.totalorder %s3629_s18, 1  ;;  %p164_p8 = scmp.lt.s32.totalorder %s3629_s18, 3 }
   0xc   : > { %p165_p9 = pnand %p2888_p7, %p164_p8 }
   0xd   : > { %p189_p10 = scmp.lt.s32.totalorder (!%p165_p9), %s3680_s19, 1  ;;  %s186_s22 = sand.u32 (!%p165_p9), 1, %s3621_s16  }
   0xe   : > { %168 = sbr.rel (%p165_p9) target bundleno = 1051 (0x41b), region = 36  ;;  %s2889_s23 = sshll.u32 (!%p165_p9), %s186_s22, 3 }
   0xf   : > { %s2989_s29 = sshll.u32 (!%p165_p9), %s3680_s19, 7  ;;  %s188_s30 = scalar_lea.vmem (!%p165_p9), [#allocation2], %s2889_s23 }
  0x10   : > { %s2826_s5 = sshll.u32 (!%p165_p9), %s188_s30, 4  ;;  %s4222_s8 = scalar_lea.hbm (!%p165_p9), %s4264_s4, %s2989_s29  ;;  %s2827_s5 = int_to_ptr.vmem [resolvable:$true] %s2826_s5 }
  0x13   : > { %v3489_v0 = vld [vmem:[%s4261_s1 + $0x8] sm:$0xff]   ;;  %v3631_v1 = vmov 0.0   ;;  %v3490_v2 = vld [vmem:[%s4261_s1 + $0x18] sm:$0xff]   ;;  %v3491_v3 = vld [vmem:[%s4261_s1] sm:$0xff]   ;;  %vm3632_vm0 = vmmov 0   ;;  %s190_s9 = scalar_select %p189_p10, %s3680_s19, 1 }
  0x14   : > { %3112 = vmatprep.subr.bf16.mxu0 %v3631_v1  ;;  %3120 = vmatprep.subr.bf16.mxu1 %v3631_v1  ;;  %v3492_v4 = vld [vmem:[%s4261_s1 + $0x10] sm:$0xff]   ;;  %v3493_v5 = vld [vmem:[%s4261_s1 + $0x28] sm:$0xff]   ;;  %v3494_v6 = vld [vmem:[%s4261_s1 + $0x38] sm:$0xff]   ;;  %vm304_vm1 = vcmask 261120   ;;  %vm1560_vm2 = vcmask 31744   ;;  %vm2021_vm3 = vcmask 1043456  }
  0x15   : > { %3113 = vmatpush3.bf16.msra.mxu0 %v3489_v0  ;;  %3116 = vmatprep.mubr.msk.bf16.mxu0 %vm3632_vm0, %v3631_v1  ;;  %s2890_s10 = sshll.u32 %s190_s9, 3  ;;  %v3495_v9 = vld [vmem:[%s4261_s1 + $0x20] sm:$0xff]   ;;  %v3496_v10 = vld [vmem:[%s4261_s1 + $0x30] sm:$0xff]   ;;  %v3497_v11 = vld [vmem:[%s4261_s1 + $0x48] sm:$0xff]   ;;  %vm1929_vm4 = vcmask 64512   ;;  %vm2422_vm5 = vcmask 1041408  }
  0x16   : > { %3121 = vmatpush3.bf16.msra.mxu1 %v3490_v2  ;;  %3114 = vmatprep.subr.bf16.mxu0 %v3631_v1  ;;  %s192_s20 = scalar_lea.vmem %s4260_s0, %s2890_s10  ;;  %v3498_v12 = vld [vmem:[%s4261_s1 + $0x58] sm:$0xff]   ;;  %v3499_v13 = vld [vmem:[%s4261_s1 + $0x40] sm:$0xff]   ;;  %v3500_v14 = vld [vmem:[%s4261_s1 + $0x50] sm:$0xff]   ;;  %s2813_s9 = scalar_lea.sflag [#allocation3], %s186_s22 }
  0x17   : > { %3122 = vmatprep.subr.bf16.mxu1 %v3631_v1  ;;  %3124 = vmatprep.mubr.msk.bf16.mxu1 %vm3632_vm0, %v3631_v1  ;;  %v194_v7 = vld [vmem:[%s192_s20] sm:$0xff]  ;;  %v3501_v15 = vld [vmem:[%s4261_s1 + $0x68] sm:$0xff]   ;;  %v3502_v16 = vld [vmem:[%s4261_s1 + $0x78] sm:$0xff]   ;;  %s3569_s10 = scalar_lea.vmem %s2827_s5, 128  ;;  %s3633_s19 = smov [#allocation2]  }
  0x18   : > { %v3740_v8 = vpack.c.bf16 %v194_v7, %v194_v7  ;;  %v3503_v17 = vld [vmem:[%s4261_s1 + $0x60] sm:$0xff]   ;;  %v3504_v18 = vld [vmem:[%s4261_s1 + $0x70] sm:$0xff]   ;;  %v3505_v19 = vld [vmem:[%s4261_s1 + $0x88] sm:$0xff]   ;;  %p3570_p11 = scmp.ne.s32.totalorder %s2827_s5, %s3569_s10  ;;  %s3573_s11 = sshll.u32 %s3633_s19, 4  ;;  %s3574_s11 = int_to_ptr.vmem [resolvable:$false] %s3573_s11 }
  0x19   : > { %3115 = vmatpush3.bf16.msra.mxu0 %v3491_v3  ;;  %v3506_v20 = vld [vmem:[%s4261_s1 + $0x98] sm:$0xff]   ;;  %v3507_v21 = vld [vmem:[%s4261_s1 + $0x80] sm:$0xff]   ;;  %v3508_v22 = vld [vmem:[%s4261_s1 + $0x90] sm:$0xff]   ;;  %s3575_s12 = scalar_lea.vmem %s3574_s11, 256  ;;  %p3576_p0 = scmp.lt.s32.totalorder %s2827_s5, %s3574_s11 }
  0x1a   : > { %3123 = vmatpush3.bf16.msra.mxu1 %v3492_v4  ;;  %3128 = vmatprep.subr.bf16.mxu0 %v3631_v1  ;;  %v3509_v23 = vld [vmem:[%s4261_s1 + $0xa8] sm:$0xff]   ;;  %v3510_v24 = vld [vmem:[%s4261_s1 + $0xb8] sm:$0xff]   ;;  %v3511_v25 = vld [vmem:[%s4261_s1 + $0xa0] sm:$0xff]   ;;  %p3571_p12 = pnand %p3570_p11, %p3697_p5  ;;  %p3577_p1 = scmp.lt.s32.totalorder %s3575_s12, %s3569_s10 }
  0x1b   : > { %3136 = vmatprep.subr.bf16.mxu1 %v3631_v1  ;;  %v3512_v26 = vld [vmem:[%s4261_s1 + $0xb0] sm:$0xff]   ;;  %v3513_v27 = vld [vmem:[%s4261_s1 + $0xc8] sm:$0xff]   ;;  %v3514_v28 = vld [vmem:[%s4261_s1 + $0xd8] sm:$0xff]  }
  0x1c   : > { %3117 = vmatmul.mubr.msk.bf16.vlgmr.msra.gmra.mxu0 %vm304_vm1, %v3740_v8  ;;  %v3515_v29 = vld [vmem:[%s4261_s1 + $0xc0] sm:$0xff]   ;;  %v3516_v30 = vld [vmem:[%s4261_s1 + $0xd0] sm:$0xff]   ;;  %v3517_v31 = vld [vmem:[%s4261_s1 + $0xe8] sm:$0xff]   ;;  %p3572_p13 = pneg %p3571_p12  ;;  %p3578_p2 = por %p3577_p1, %p3576_p0 }
  0x1d   : > { %3125 = vmatmul.mubr.msk.bf16.vlgmr.msra.gmra.mxu1 %vm304_vm1, %v3740_v8  ;;  %3129 = vmatpush3.bf16.msra.mxu0 %v3493_v5  ;;  %v3518_v32 = vld [vmem:[%s4261_s1 + $0xf8] sm:$0xff]   ;;  %v3519_v33 = vld [vmem:[%s4261_s1 + $0xe0] sm:$0xff]   ;;  %v3520_v34 = vld [vmem:[%s4261_s1 + $0xf0] sm:$0xff]  }
  0x1e   : > { %3137 = vmatpush3.bf16.msra.mxu1 %v3494_v6  ;;  %3130 = vmatprep.subr.bf16.mxu0 %v3631_v1  ;;  %v3521_v35 = vld [vmem:[%s4261_s1 + $0x108] sm:$0xff]   ;;  %v3522_v36 = vld [vmem:[%s4261_s1 + $0x100] sm:$0xff]   ;;  %v3523_v37 = vld [vmem:[%s4261_s1 + $0x118] sm:$0xff]   ;;  %p3579_p3 = pnand %p3578_p2, %p3572_p13 }
  0x1f   : > { %3138 = vmatprep.subr.bf16.mxu1 %v3631_v1  ;;  %3132 = vmatprep.mubr.msk.bf16.mxu0 %vm3632_vm0, %v3631_v1  ;;  %v3524_v38 = vld [vmem:[%s4261_s1 + $0x110] sm:$0xff]   ;;  %v3525_v39 = vld [vmem:[%s4261_s1 + $0x128] sm:$0xff]   ;;  %v3526_v40 = vld [vmem:[%s4261_s1 + $0x120] sm:$0xff]  }
  0x20   : > { %3140 = vmatprep.mubr.msk.bf16.mxu1 %vm3632_vm0, %v3631_v1  ;;  %v3527_v41 = vld [vmem:[%s4261_s1 + $0x138] sm:$0xff]   ;;  %v3528_v42 = vld [vmem:[%s4261_s1 + $0x130] sm:$0xff]   ;;  %v3529_v43 = vld [vmem:[%s4261_s1 + $0x148] sm:$0xff]  }
  0x21   : > { %3131 = vmatpush3.bf16.msra.mxu0 %v3495_v9  ;;  %v3530_v44 = vld [vmem:[%s4261_s1 + $0x140] sm:$0xff]   ;;  %v3531_v45 = vld [vmem:[%s4261_s1 + $0x158] sm:$0xff]   ;;  %v3532_v46 = vld [vmem:[%s4261_s1 + $0x150] sm:$0xff]  }
  0x22   : > { %3139 = vmatpush3.bf16.msra.mxu1 %v3496_v10  ;;  %3144 = vmatprep.subr.bf16.mxu0 %v3631_v1  ;;  %v3533_v47 = vld [vmem:[%s4261_s1 + $0x168] sm:$0xff]   ;;  %v3534_v48 = vld [vmem:[%s4261_s1 + $0x160] sm:$0xff]   ;;  %v3535_v49 = vld [vmem:[%s4261_s1 + $0x178] sm:$0xff]  }
  0x23   : > { %3152 = vmatprep.subr.bf16.mxu1 %v3631_v1  ;;  %v3536_v50 = vld [vmem:[%s4261_s1 + $0x170] sm:$0xff]  }
  0x24   : > { %3133 = vmatmul.mubr.msk.bf16.vlgmr.msra.gmra.mxu0 %vm304_vm1, %v3740_v8 }
  0x25   : > { %3141 = vmatmul.mubr.msk.bf16.vlgmr.msra.gmra.mxu1 %vm304_vm1, %v3740_v8  ;;  %3145 = vmatpush3.bf16.msra.mxu0 %v3497_v11 }
  0x26   : > { %3153 = vmatpush3.bf16.msra.mxu1 %v3498_v12  ;;  %3146 = vmatprep.subr.bf16.mxu0 %v3631_v1 }
  0x27   : > { %3154 = vmatprep.subr.bf16.mxu1 %v3631_v1  ;;  %3148 = vmatprep.mubr.msk.bf16.mxu0 %vm3632_vm0, %v3631_v1 }
  0x28   : > { %3156 = vmatprep.mubr.msk.bf16.mxu1 %vm3632_vm0, %v3631_v1 }
  0x29   : > { %3147 = vmatpush3.bf16.msra.mxu0 %v3499_v13 }
  0x2a   : > { %3155 = vmatpush3.bf16.msra.mxu1 %v3500_v14  ;;  %3160 = vmatprep.subr.bf16.mxu0 %v3631_v1 }
  0x2b   : > { %3168 = vmatprep.subr.bf16.mxu1 %v3631_v1 }
  0x2c   : > { %3149 = vmatmul.mubr.msk.bf16.vlgmr.msra.gmra.mxu0 %vm304_vm1, %v3740_v8 }
  0x2d   : > { %3157 = vmatmul.mubr.msk.bf16.vlgmr.msra.gmra.mxu1 %vm304_vm1, %v3740_v8  ;;  %3161 = vmatpush3.bf16.msra.mxu0 %v3501_v15 }
  0x2e   : > { %3169 = vmatpush3.bf16.msra.mxu1 %v3502_v16  ;;  %3162 = vmatprep.subr.bf16.mxu0 %v3631_v1 }
  0x2f   : > { %3170 = vmatprep.subr.bf16.mxu1 %v3631_v1  ;;  %3164 = vmatprep.mubr.msk.bf16.mxu0 %vm3632_vm0, %v3631_v1 }
  0x30   : > { %3172 = vmatprep.mubr.msk.bf16.mxu1 %vm3632_vm0, %v3631_v1 }
  0x31   : > { %3163 = vmatpush3.bf16.msra.mxu0 %v3503_v17 }
  0x32   : > { %3171 = vmatpush3.bf16.msra.mxu1 %v3504_v18  ;;  %3176 = vmatprep.subr.bf16.mxu0 %v3631_v1 }
  0x33   : > { %3184 = vmatprep.subr.bf16.mxu1 %v3631_v1 }
  0x34   : > { %3165 = vmatmul.mubr.msk.bf16.vlgmr.msra.gmra.mxu0 %vm304_vm1, %v3740_v8 }
  0x35   : > { %3173 = vmatmul.mubr.msk.bf16.vlgmr.msra.gmra.mxu1 %vm304_vm1, %v3740_v8  ;;  %3177 = vmatpush3.bf16.msra.mxu0 %v3505_v19 }
  0x36   : > { %3185 = vmatpush3.bf16.msra.mxu1 %v3506_v20  ;;  %3178 = vmatprep.subr.bf16.mxu0 %v3631_v1 }
  0x37   : > { %3186 = vmatprep.subr.bf16.mxu1 %v3631_v1  ;;  %3180 = vmatprep.mubr.msk.bf16.mxu0 %vm3632_vm0, %v3631_v1 }
  0x38   : > { %3188 = vmatprep.mubr.msk.bf16.mxu1 %vm3632_vm0, %v3631_v1 }
  0x39   : > { %3179 = vmatpush3.bf16.msra.mxu0 %v3507_v21 }
  0x3a   : > { %3187 = vmatpush3.bf16.msra.mxu1 %v3508_v22  ;;  %3192 = vmatprep.subr.bf16.mxu0 %v3631_v1 }
  0x3b   : > { %3200 = vmatprep.subr.bf16.mxu1 %v3631_v1 }
  0x3c   : > { %3181 = vmatmul.mubr.msk.bf16.vlgmr.msra.gmra.mxu0 %vm304_vm1, %v3740_v8 }
  0x3d   : > { %3189 = vmatmul.mubr.msk.bf16.vlgmr.msra.gmra.mxu1 %vm304_vm1, %v3740_v8  ;;  %3193 = vmatpush3.bf16.msra.mxu0 %v3509_v23 }
  0x3e   : > { %3201 = vmatpush3.bf16.msra.mxu1 %v3510_v24  ;;  %3194 = vmatprep.subr.bf16.mxu0 %v3631_v1 }
  0x3f   : > { %3202 = vmatprep.subr.bf16.mxu1 %v3631_v1  ;;  %3196 = vmatprep.mubr.msk.bf16.mxu0 %vm3632_vm0, %v3631_v1 }
  0x40   : > { %3204 = vmatprep.mubr.msk.bf16.mxu1 %vm3632_vm0, %v3631_v1 }
  0x41   : > { %3195 = vmatpush3.bf16.msra.mxu0 %v3511_v25 }
  0x42   : > { %3203 = vmatpush3.bf16.msra.mxu1 %v3512_v26  ;;  %3208 = vmatprep.subr.bf16.mxu0 %v3631_v1 }
  0x43   : > { %3216 = vmatprep.subr.bf16.mxu1 %v3631_v1 }
  0x44   : > { %3197 = vmatmul.mubr.msk.bf16.vlgmr.msra.gmra.mxu0 %vm304_vm1, %v3740_v8 }
  0x45   : > { %3205 = vmatmul.mubr.msk.bf16.vlgmr.msra.gmra.mxu1 %vm304_vm1, %v3740_v8  ;;  %3209 = vmatpush3.bf16.msra.mxu0 %v3513_v27 }
  0x46   : > { %3217 = vmatpush3.bf16.msra.mxu1 %v3514_v28  ;;  %3210 = vmatprep.subr.bf16.mxu0 %v3631_v1 }
  0x47   : > { %3218 = vmatprep.subr.bf16.mxu1 %v3631_v1  ;;  %3212 = vmatprep.mubr.msk.bf16.mxu0 %vm3632_vm0, %v3631_v1 }
  0x48   : > { %3220 = vmatprep.mubr.msk.bf16.mxu1 %vm3632_vm0, %v3631_v1 }
  0x49   : > { %3211 = vmatpush3.bf16.msra.mxu0 %v3515_v29 }
  0x4a   : > { %3219 = vmatpush3.bf16.msra.mxu1 %v3516_v30  ;;  %3224 = vmatprep.subr.bf16.mxu0 %v3631_v1 }
  0x4b   : > { %3232 = vmatprep.subr.bf16.mxu1 %v3631_v1 }
  0x4c   : > { %3213 = vmatmul.mubr.msk.bf16.vlgmr.msra.gmra.mxu0 %vm304_vm1, %v3740_v8 }
  0x4d   : > { %3221 = vmatmul.mubr.msk.bf16.vlgmr.msra.gmra.mxu1 %vm304_vm1, %v3740_v8  ;;  %3225 = vmatpush3.bf16.msra.mxu0 %v3517_v31 }
  0x4e   : > { %3233 = vmatpush3.bf16.msra.mxu1 %v3518_v32  ;;  %3226 = vmatprep.subr.bf16.mxu0 %v3631_v1 }
  0x4f   : > { %3234 = vmatprep.subr.bf16.mxu1 %v3631_v1  ;;  %3228 = vmatprep.mubr.msk.bf16.mxu0 %vm3632_vm0, %v3631_v1 }
  0x50   : > { %3236 = vmatprep.mubr.msk.bf16.mxu1 %vm3632_vm0, %v3631_v1 }
  0x51   : > { %3227 = vmatpush3.bf16.msra.mxu0 %v3519_v33 }
  0x52   : > { %3235 = vmatpush3.bf16.msra.mxu1 %v3520_v34  ;;  %3240 = vmatprep.subr.bf16.mxu0 %v3631_v1 }
  0x53   : > { %3248 = vmatprep.subr.bf16.mxu1 %v3631_v1 }
  0x54   : > { %3229 = vmatmul.mubr.msk.bf16.vlgmr.msra.gmra.mxu0 %vm304_vm1, %v3740_v8 }
  0x55   : > { %3237 = vmatmul.mubr.msk.bf16.vlgmr.msra.gmra.mxu1 %vm304_vm1, %v3740_v8  ;;  %3241 = vmatpush3.bf16.msra.mxu0 %v3521_v35 }
  0x56   : > { %3244 = vmatprep.mubr.msk.bf16.mxu0 %vm3632_vm0, %v3631_v1  ;;  %3242 = vmatprep.subr.bf16.mxu0 %v3631_v1 }
  0x57   : > { %3252 = vmatprep.mubr.msk.bf16.mxu1 %vm3632_vm0, %v3631_v1  ;;  %3249 = vmatpush3.bf16.msra.mxu1 %v3523_v37 }
  0x58   : > { %3250 = vmatprep.subr.bf16.mxu1 %v3631_v1 }
  0x59   : > { %3243 = vmatpush3.bf16.msra.mxu0 %v3522_v36 }
  0x5a   : > { %3256 = vmatprep.subr.bf16.mxu0 %v3631_v1 }
  0x5b   : > { %3251 = vmatpush3.bf16.msra.mxu1 %v3524_v38 }
  0x5c   : > { %3245 = vmatmul.mubr.msk.bf16.vlgmr.msra.gmra.mxu0 %vm304_vm1, %v3740_v8  ;;  %3264 = vmatprep.subr.bf16.mxu1 %v3631_v1 }
  0x5d   : > { %3257 = vmatpush3.bf16.msra.mxu0 %v3525_v39  ;;  %3260 = vmatprep.mubr.msk.bf16.mxu0 %vm3632_vm0, %v3631_v1 }
  0x5e   : > { %3258 = vmatprep.subr.bf16.mxu0 %v3631_v1  ;;  %3253 = vmatmul.mubr.msk.bf16.vlgmr.msra.gmra.mxu1 %vm304_vm1, %v3740_v8 }
  0x5f   : > { %3265 = vmatpush3.bf16.msra.mxu1 %v3527_v41  ;;  %3268 = vmatprep.mubr.msk.bf16.mxu1 %vm3632_vm0, %v3631_v1 }
  0x60   : > { %3266 = vmatprep.subr.bf16.mxu1 %v3631_v1 }
  0x61   : > { %3259 = vmatpush3.bf16.msra.mxu0 %v3526_v40 }
  0x62   : > { %3272 = vmatprep.subr.bf16.mxu0 %v3631_v1 }
  0x63   : > { %3267 = vmatpush3.bf16.msra.mxu1 %v3528_v42 }
  0x64   : > { %3261 = vmatmul.mubr.msk.bf16.vlgmr.msra.gmra.mxu0 %vm304_vm1, %v3740_v8  ;;  %3280 = vmatprep.subr.bf16.mxu1 %v3631_v1 }
  0x65   : > { %3273 = vmatpush3.bf16.msra.mxu0 %v3529_v43  ;;  %3276 = vmatprep.mubr.msk.bf16.mxu0 %vm3632_vm0, %v3631_v1 }
  0x66   : > { %3274 = vmatprep.subr.bf16.mxu0 %v3631_v1  ;;  %3269 = vmatmul.mubr.msk.bf16.vlgmr.msra.gmra.mxu1 %vm304_vm1, %v3740_v8 }
  0x67   : > { %3281 = vmatpush3.bf16.msra.mxu1 %v3531_v45  ;;  %3284 = vmatprep.mubr.msk.bf16.mxu1 %vm3632_vm0, %v3631_v1 }
  0x68   : > { %3282 = vmatprep.subr.bf16.mxu1 %v3631_v1 }
  0x69   : > { %3275 = vmatpush3.bf16.msra.mxu0 %v3530_v44 }
  0x6a   : > { %3288 = vmatprep.subr.bf16.mxu0 %v3631_v1 }
  0x6b   : > { %3283 = vmatpush3.bf16.msra.mxu1 %v3532_v46 }
  0x6c   : > { %3277 = vmatmul.mubr.msk.bf16.vlgmr.msra.gmra.mxu0 %vm304_vm1, %v3740_v8  ;;  %3296 = vmatprep.subr.bf16.mxu1 %v3631_v1 }
  0x6d   : > { %3289 = vmatpush3.bf16.msra.mxu0 %v3533_v47  ;;  %3292 = vmatprep.mubr.msk.bf16.mxu0 %vm3632_vm0, %v3631_v1 }
  0x6e   : > { %3290 = vmatprep.subr.bf16.mxu0 %v3631_v1  ;;  %3285 = vmatmul.mubr.msk.bf16.vlgmr.msra.gmra.mxu1 %vm304_vm1, %v3740_v8 }
  0x6f   : > { %3297 = vmatpush3.bf16.msra.mxu1 %v3535_v49  ;;  %3300 = vmatprep.mubr.msk.bf16.mxu1 %vm3632_vm0, %v3631_v1 }
  0x70   : > { %3298 = vmatprep.subr.bf16.mxu1 %v3631_v1 }
  0x71   : > { %3291 = vmatpush3.bf16.msra.mxu0 %v3534_v48 }
  0x72   : > { %3304 = vmatprep.subr.bf16.mxu0 %v3631_v1 }
  0x73   : > { %3299 = vmatpush3.bf16.msra.mxu1 %v3536_v50 }
  0x74   : > { %3293 = vmatmul.mubr.msk.bf16.vlgmr.msra.gmra.mxu0 %vm304_vm1, %v3740_v8  ;;  %3310 = vmatprep.subr.bf16.mxu1 %v3631_v1 }
  0x75   : > { %3306 = vmatprep.mubr.msk.bf16.mxu0 %vm3632_vm0, %v3631_v1 }
  0x76   : > { %3301 = vmatmul.mubr.msk.bf16.vlgmr.msra.gmra.mxu1 %vm304_vm1, %v3740_v8 }
  0x77   : > { %3312 = vmatprep.mubr.msk.bf16.mxu1 %vm3632_vm0, %v3631_v1 }
  0xdc   : > { %v342_v51 = vpop.f32.mrf.mxu0 }
  0xdd   : > { %v394_v52 = vpop.f32.mrf.mxu1  ;;  %v1544_v34 = vpack.c.bf16 %v342_v51, %v342_v51 }
  0xde   : > { %v3118_v53 = vpop.f32.mrf.mxu0  ;;  %v1545_v35 = vpack.c.bf16 %v394_v52, %v394_v52 }
  0xdf   : > { %v3126_v54 = vpop.f32.mrf.mxu1 }
  0xe0   : > { %v345_v55 = vpop.f32.mrf.mxu0 }
  0xe1   : > { %v397_v56 = vpop.f32.mrf.mxu1 }
  0xe2   : > { %v3119_v57 = vpop.f32.mrf.mxu0 }
  0xe3   : > { %v3127_v58 = vpop.f32.mrf.mxu1 }
  0xe4   : > { %v4008_v59 = vpop.f32.mrf.mxu0 }
  0xe5   : > { %v4010_v60 = vpop.f32.mrf.mxu1  ;;  %v1546_v48 = vpack.c.bf16 %v4008_v59, %v4008_v59 }
  0xe6   : > { %v3134_v61 = vpop.f32.mrf.mxu0  ;;  %v1547_v49 = vpack.c.bf16 %v4010_v60, %v4010_v60 }
  0xe7   : > { %v3142_v62 = vpop.f32.mrf.mxu1 }
  0xe8   : > { %v449_v63 = vpop.f32.mrf.mxu0 }
  0xe9   : > { %v501_v0 = vpop.f32.mrf.mxu1 }
  0xea   : > { %v3135_v2 = vpop.f32.mrf.mxu0 }
  0xeb   : > { %v3143_v3 = vpop.f32.mrf.mxu1 }
  0xec   : > { %v4012_v4 = vpop.f32.mrf.mxu0 }
  0xed   : > { %v4014_v5 = vpop.f32.mrf.mxu1  ;;  %v1548_v62 = vpack.c.bf16 %v4012_v4, %v4012_v4 }
  0xee   : > { %v3150_v6 = vpop.f32.mrf.mxu0  ;;  %v1549_v63 = vpack.c.bf16 %v4014_v5, %v4014_v5 }
  0xef   : > { %v3158_v7 = vpop.f32.mrf.mxu1 }
  0xf0   : > { %v553_v8 = vpop.f32.mrf.mxu0 }
  0xf1   : > { %v605_v9 = vpop.f32.mrf.mxu1 }
  0xf2   : > { %v3151_v10 = vpop.f32.mrf.mxu0 }
  0xf3   : > { %v3159_v11 = vpop.f32.mrf.mxu1 }
  0xf4   : > { %v4016_v12 = vpop.f32.mrf.mxu0 }
  0xf5   : > { %v4018_v13 = vpop.f32.mrf.mxu1  ;;  %v1550_v11 = vpack.c.bf16 %v4016_v12, %v4016_v12 }
  0xf6   : > { %v3166_v14 = vpop.f32.mrf.mxu0 }
  0xf7   : > { %v3174_v15 = vpop.f32.mrf.mxu1  ;;  %v1551_v14 = vpack.c.bf16 %v4018_v13, %v4018_v13 }
  0xf8   : > { %v657_v16 = vpop.f32.mrf.mxu0 }
  0xf9   : > { %v709_v17 = vpop.f32.mrf.mxu1 }
  0xfa   : > { %v3167_v18 = vpop.f32.mrf.mxu0 }
  0xfb   : > { %v3175_v19 = vpop.f32.mrf.mxu1 }
  0xfc   : > { %v758_v20 = vpop.f32.mrf.mxu0 }
  0xfd   : > { %v810_v21 = vpop.f32.mrf.mxu1  ;;  %v1552_v22 = vpack.c.bf16 %v758_v20, %v758_v20 }
  0xfe   : > { %v1553_v23 = vpack.c.bf16 %v810_v21, %v810_v21  ;;  %v3182_v24 = vpop.f32.mrf.mxu0 }
  0xff   : > { %v3190_v25 = vpop.f32.mrf.mxu1  ;;  %v1565_v26 = vsel %vm1560_vm2, %v1552_v22, 0 }
 0x100   : > { %v1611_v27 = vsel %vm1560_vm2, %v1553_v23, 0  ;;  %v761_v28 = vpop.f32.mrf.mxu0  ;;  %3305 = vmatpush3.bf16.xpose.msra.mxu0 %v1565_v26 }
 0x101   : > { %v813_v29 = vpop.f32.mrf.mxu1  ;;  %3311 = vmatpush3.bf16.xpose.msra.mxu1 %v1611_v27  ;;  %3316 = vmatprep.subr.bf16.mxu0 %v3631_v1 }
 0x102   : > { %3322 = vmatprep.subr.bf16.mxu1 %v3631_v1  ;;  %v3183_v30 = vpop.f32.mrf.mxu0 }
 0x103   : > { %v3191_v31 = vpop.f32.mrf.mxu1 }
 0x104   : > { %v862_v32 = vpop.f32.mrf.mxu0 }
 0x105   : > { %v914_v33 = vpop.f32.mrf.mxu1  ;;  %v1554_v36 = vpack.c.bf16 %v862_v32, %v862_v32 }
 0x106   : > { %v1555_v37 = vpack.c.bf16 %v914_v33, %v914_v33  ;;  %v3198_v38 = vpop.f32.mrf.mxu0 }
 0x107   : > { %v3206_v39 = vpop.f32.mrf.mxu1  ;;  %v1657_v40 = vsel %vm1560_vm2, %v1554_v36, 0  ;;  %3307 = vmatmul.mubr.msk.bf16.vlgmr.msra.gmra.mxu0 %vm1560_vm2, %v1544_v34 }
 0x108   : > { %v1703_v41 = vsel %vm1560_vm2, %v1555_v37, 0  ;;  %3313 = vmatmul.mubr.msk.bf16.vlgmr.msra.gmra.mxu1 %vm1560_vm2, %v1545_v35  ;;  %v865_v42 = vpop.f32.mrf.mxu0  ;;  %3317 = vmatpush3.bf16.xpose.msra.mxu0 %v1657_v40 }
 0x109   : > { %v917_v43 = vpop.f32.mrf.mxu1  ;;  %3323 = vmatpush3.bf16.xpose.msra.mxu1 %v1703_v41  ;;  %3318 = vmatprep.mubr.msk.bf16.mxu0 %vm3632_vm0, %v3631_v1 }
 0x10a   : > { %3324 = vmatprep.mubr.msk.bf16.mxu1 %vm3632_vm0, %v3631_v1  ;;  %v3199_v44 = vpop.f32.mrf.mxu0  ;;  %3328 = vmatprep.subr.bf16.mxu0 %v3631_v1 }
 0x10b   : > { %v3207_v45 = vpop.f32.mrf.mxu1  ;;  %3334 = vmatprep.subr.bf16.mxu1 %v3631_v1 }
 0x10c   : > { %v966_v46 = vpop.f32.mrf.mxu0 }
 0x10d   : > { %v1018_v47 = vpop.f32.mrf.mxu1  ;;  %v1556_v50 = vpack.c.bf16 %v966_v46, %v966_v46 }
 0x10e   : > { %v1557_v51 = vpack.c.bf16 %v1018_v47, %v1018_v47  ;;  %v3214_v52 = vpop.f32.mrf.mxu0 }
 0x10f   : > { %v3222_v53 = vpop.f32.mrf.mxu1  ;;  %v1749_v54 = vsel %vm1560_vm2, %v1556_v50, 0  ;;  %3319 = vmatmul.mubr.msk.bf16.vlgmr.msra.gmra.mxu0 %vm1560_vm2, %v1546_v48 }
 0x110   : > { %v1795_v55 = vsel %vm1560_vm2, %v1557_v51, 0  ;;  %3325 = vmatmul.mubr.msk.bf16.vlgmr.msra.gmra.mxu1 %vm1560_vm2, %v1547_v49  ;;  %v969_v56 = vpop.f32.mrf.mxu0  ;;  %3329 = vmatpush3.bf16.xpose.msra.mxu0 %v1749_v54 }
 0x111   : > { %v1021_v57 = vpop.f32.mrf.mxu1  ;;  %3335 = vmatpush3.bf16.xpose.msra.mxu1 %v1795_v55  ;;  %3330 = vmatprep.mubr.msk.bf16.mxu0 %vm3632_vm0, %v3631_v1 }
 0x112   : > { %3336 = vmatprep.mubr.msk.bf16.mxu1 %vm3632_vm0, %v3631_v1  ;;  %v3215_v58 = vpop.f32.mrf.mxu0  ;;  %3340 = vmatprep.subr.bf16.mxu0 %v3631_v1 }
 0x113   : > { %v3223_v59 = vpop.f32.mrf.mxu1  ;;  %3346 = vmatprep.subr.bf16.mxu1 %v3631_v1 }
 0x114   : > { %v1070_v60 = vpop.f32.mrf.mxu0 }
 0x115   : > { %v1122_v61 = vpop.f32.mrf.mxu1  ;;  %v1558_v0 = vpack.c.bf16 %v1070_v60, %v1070_v60 }
 0x116   : > { %v1559_v2 = vpack.c.bf16 %v1122_v61, %v1122_v61  ;;  %v3230_v3 = vpop.f32.mrf.mxu0 }
 0x117   : > { %v3238_v6 = vpop.f32.mrf.mxu1  ;;  %v1841_v7 = vsel %vm1560_vm2, %v1558_v0, 0  ;;  %3331 = vmatmul.mubr.msk.bf16.vlgmr.msra.gmra.mxu0 %vm1560_vm2, %v1548_v62 }
 0x118   : > { %v1887_v8 = vsel %vm1560_vm2, %v1559_v2, 0  ;;  %3337 = vmatmul.mubr.msk.bf16.vlgmr.msra.gmra.mxu1 %vm1560_vm2, %v1549_v63  ;;  %v1073_v9 = vpop.f32.mrf.mxu0  ;;  %3341 = vmatpush3.bf16.xpose.msra.mxu0 %v1841_v7 }
 0x119   : > { %v1125_v10 = vpop.f32.mrf.mxu1  ;;  %3347 = vmatpush3.bf16.xpose.msra.mxu1 %v1887_v8  ;;  %3342 = vmatprep.mubr.msk.bf16.mxu0 %vm3632_vm0, %v3631_v1 }
 0x11a   : > { %3348 = vmatprep.mubr.msk.bf16.mxu1 %vm3632_vm0, %v3631_v1  ;;  %v3231_v4 = vpop.f32.mrf.mxu0  ;;  %3352 = vmatprep.subr.bf16.mxu0 %v3631_v1 }
 0x11b   : > { %v3239_v5 = vpop.f32.mrf.mxu1  ;;  %3358 = vmatprep.subr.bf16.mxu1 %v3631_v1 }
 0x11c   : > { %v1174_v15 = vpop.f32.mrf.mxu0 }
 0x11d   : > { %v2010_v16 = vpack.c.bf16 %v1174_v15, %v1174_v15 }
 0x11e   : > { %v3246_v17 = vpop.f32.mrf.mxu0  ;;  %v1226_v19 = vpop.f32.mrf.mxu1 }
 0x11f   : > { %3343 = vmatmul.mubr.msk.bf16.vlgmr.msra.gmra.mxu0 %vm1560_vm2, %v1550_v11  ;;  %v2023_v18 = vsel %vm2021_vm3, %v2010_v16, 0  ;;  %v2011_v13 = vpack.c.bf16 %v1226_v19, %v1226_v19 }
 0x120   : > { %3349 = vmatmul.mubr.msk.bf16.vlgmr.msra.gmra.mxu1 %vm1560_vm2, %v1551_v14  ;;  %3354 = vmatprep.mubr.msk.bf16.mxu0 %vm3632_vm0, %v3631_v1  ;;  %v1177_v12 = vpop.f32.mrf.mxu0  ;;  %v3254_v21 = vpop.f32.mrf.mxu1 }
 0x121   : > { %3360 = vmatprep.mubr.msk.bf16.mxu1 %vm3632_vm0, %v3631_v1  ;;  %3353 = vmatpush3.bf16.msra.mxu0 %v2023_v18  ;;  %v2069_v22 = vsel %vm2021_vm3, %v2011_v13, 0 }
 0x122   : > { %3364 = vmatprep.subr.bf16.mxu0 %v3631_v1  ;;  %v3247_v20 = vpop.f32.mrf.mxu0  ;;  %v1229_v23 = vpop.f32.mrf.mxu1  ;;  %3359 = vmatpush3.bf16.msra.mxu1 %v2069_v22 }
 0x123   : > { %3370 = vmatprep.subr.bf16.mxu1 %v3631_v1 }
 0x124   : > { %v1278_v24 = vpop.f32.mrf.mxu0  ;;  %v3255_v26 = vpop.f32.mrf.mxu1 }
 0x125   : > { %v2012_v25 = vpack.c.bf16 %v1278_v24, %v1278_v24 }
 0x126   : > { %v3262_v27 = vpop.f32.mrf.mxu0  ;;  %v1330_v30 = vpop.f32.mrf.mxu1 }
 0x127   : > { %v4077_v28 = vsel %vm2021_vm3, %v2012_v25, 0  ;;  %v2013_v31 = vpack.c.bf16 %v1330_v30, %v1330_v30 }
 0x128   : > { %v1281_v29 = vpop.f32.mrf.mxu0  ;;  %v3270_v33 = vpop.f32.mrf.mxu1 }
 0x129   : > { %v4080_v34 = vsel %vm2021_vm3, %v2013_v31, 0 }
 0x12a   : > { %v3263_v32 = vpop.f32.mrf.mxu0  ;;  %v1333_v35 = vpop.f32.mrf.mxu1 }
 0x12c   : > { %v1382_v36 = vpop.f32.mrf.mxu0  ;;  %v3271_v38 = vpop.f32.mrf.mxu1 }
 0x12d   : > { %v2014_v37 = vpack.c.bf16 %v1382_v36, %v1382_v36 }
 0x12e   : > { %v3278_v39 = vpop.f32.mrf.mxu0  ;;  %v1434_v42 = vpop.f32.mrf.mxu1 }
 0x12f   : > { %v4083_v40 = vsel %vm2021_vm3, %v2014_v37, 0  ;;  %v2015_v43 = vpack.c.bf16 %v1434_v42, %v1434_v42 }
 0x130   : > { %v1385_v41 = vpop.f32.mrf.mxu0  ;;  %v3286_v45 = vpop.f32.mrf.mxu1 }
 0x131   : > { %v4086_v46 = vsel %vm2021_vm3, %v2015_v43, 0 }
 0x132   : > { %v3279_v44 = vpop.f32.mrf.mxu0  ;;  %v1437_v47 = vpop.f32.mrf.mxu1 }
 0x134   : > { %v1486_v48 = vpop.f32.mrf.mxu0  ;;  %v3287_v50 = vpop.f32.mrf.mxu1 }
 0x135   : > { %v2016_v49 = vpack.c.bf16 %v1486_v48, %v1486_v48 }
 0x136   : > { %v3294_v51 = vpop.f32.mrf.mxu0  ;;  %v1538_v54 = vpop.f32.mrf.mxu1 }
 0x137   : > { %v4089_v52 = vsel %vm2021_vm3, %v2016_v49, 0  ;;  %v2017_v55 = vpack.c.bf16 %v1538_v54, %v1538_v54 }
 0x138   : > { %v1489_v53 = vpop.f32.mrf.mxu0  ;;  %v3302_v57 = vpop.f32.mrf.mxu1 }
 0x139   : > { %v4092_v58 = vsel %vm2021_vm3, %v2017_v55, 0 }
 0x13a   : > { %v3295_v56 = vpop.f32.mrf.mxu0  ;;  %v1541_v59 = vpop.f32.mrf.mxu1 }
 0x13c   : > { %v3303_v60 = vpop.f32.mrf.mxu1 }
 0x1c7   : > { %v1601_v61 = vpop.f32.mrf.mxu0 }
 0x1c8   : > { %v1647_v62 = vpop.f32.mrf.mxu1  ;;  %v1930_v63 = vsel %vm1929_vm4, %v1601_v61, -inf }
 0x1c9   : > { %1931 = vmax.xlane.f32.xlu0 %v1930_v63  ;;  %v3308_v2 = vpop.f32.mrf.mxu0  ;;  %v1933_v7 = vsel %vm1929_vm4, %v1647_v62, -inf }
 0x1ca   : > { %v3314_v0 = vpop.f32.mrf.mxu1 }
 0x1cb   : > { %v1604_v3 = vpop.f32.mrf.mxu0 }
 0x1cc   : > { %v1650_v6 = vpop.f32.mrf.mxu1 }
 0x1cd   : > { %1934 = vmax.xlane.f32.xlu0 %v1933_v7  ;;  %v3309_v9 = vpop.f32.mrf.mxu0 }
 0x1ce   : > { %v3315_v8 = vpop.f32.mrf.mxu1 }
 0x1cf   : > { %v1693_v10 = vpop.f32.mrf.mxu0 }
 0x1d0   : > { %v1739_v4 = vpop.f32.mrf.mxu1  ;;  %v1936_v5 = vsel %vm1929_vm4, %v1693_v10, -inf }
 0x1d1   : > { %1937 = vmax.xlane.f32.xlu1 %v1936_v5  ;;  %v3320_v14 = vpop.f32.mrf.mxu0  ;;  %v1939_v17 = vsel %vm1929_vm4, %v1739_v4, -inf }
 0x1d2   : > { %v3326_v11 = vpop.f32.mrf.mxu1 }
 0x1d3   : > { %v1696_v15 = vpop.f32.mrf.mxu0 }
 0x1d4   : > { %v1742_v16 = vpop.f32.mrf.mxu1 }
 0x1d5   : > { %1940 = vmax.xlane.f32.xlu1 %v1939_v17  ;;  %v3321_v12 = vpop.f32.mrf.mxu0 }
 0x1d6   : > { %v3327_v18 = vpop.f32.mrf.mxu1 }
 0x1d7   : > { %v1785_v19 = vpop.f32.mrf.mxu0 }
 0x1d8   : > { %v1831_v13 = vpop.f32.mrf.mxu1  ;;  %v1942_v21 = vsel %vm1929_vm4, %v1785_v19, -inf }
 0x1d9   : > { %v1945_v20 = vsel %vm1929_vm4, %v1831_v13, -inf  ;;  %1943 = vmax.xlane.f32.xlu0 %v1942_v21  ;;  %v3332_v23 = vpop.f32.mrf.mxu0 }
 0x1da   : > { %v3338_v22 = vpop.f32.mrf.mxu1  ;;  %1946 = vmax.xlane.f32.xlu1 %v1945_v20 }
 0x1db   : > { %v1788_v24 = vpop.f32.mrf.mxu0 }
 0x1dc   : > { %v1834_v25 = vpop.f32.mrf.mxu1 }
 0x1dd   : > { %v3333_v26 = vpop.f32.mrf.mxu0  ;;  %v2412_v25 = vld [vmem:[%s4262_s2 + $0x2] sm:$0x3] }
 0x1de   : > { %v3339_v27 = vpop.f32.mrf.mxu1  ;;  %v2470_v26 = vsel %vm2422_vm5, %v2412_v25, 0 }
 0x1df   : > { %v1877_v29 = vpop.f32.mrf.mxu0 }
 0x1e0   : > { %v1923_v30 = vpop.f32.mrf.mxu1  ;;  %v1948_v32 = vsel %vm1929_vm4, %v1877_v29, -inf }
 0x1e1   : > { %v1951_v31 = vsel %vm1929_vm4, %v1923_v30, -inf  ;;  %1949 = vmax.xlane.f32.xlu0 %v1948_v32  ;;  %v3344_v35 = vpop.f32.mrf.mxu0 }
 0x1e2   : > { %v3350_v33 = vpop.f32.mrf.mxu1  ;;  %1952 = vmax.xlane.f32.xlu1 %v1951_v31  ;;  %v2413_v35 = vld [vmem:[%s4262_s2 + $0x4] sm:$0x3] }
 0x1e3   : > { %v1880_v36 = vpop.f32.mrf.mxu0 }
 0x1e4   : > { %v1926_v37 = vpop.f32.mrf.mxu1 }
 0x1e5   : > { %v3345_v38 = vpop.f32.mrf.mxu0 }
 0x1e6   : > { %v3351_v39 = vpop.f32.mrf.mxu1 }
 0x252   : > { %v1932_v41 = vpop.xlane.xlu0 %1931 }
 0x253   : > { %v1954_v42 = vsub.f32 %v1601_v61, %v1932_v41 }
 0x255   : > { %v1962_v43 = vmul.f32 1.442695, %v1954_v42  ;;  %v2516_v42 = vsel %vm2422_vm5, %v2413_v35, 0 }
 0x256   : > { %v1935_v44 = vpop.xlane.xlu0 %1934 }
 0x257   : > { %3537 = vpow2.f32 %v1962_v43  ;;  %v1955_v45 = vsub.f32 %v1647_v62, %v1935_v44 }
 0x259   : > { %v1964_v47 = vmul.f32 1.442695, %v1955_v45 }
 0x25a   : > { %v1938_v48 = vpop.xlane.xlu1 %1937 }
 0x25b   : > { %3539 = vpow2.f32 %v1964_v47  ;;  %v1956_v49 = vsub.f32 %v1693_v10, %v1938_v48  ;;  %v2414_v47 = vld [vmem:[%s4262_s2 + $0x6] sm:$0x3] }
 0x25d   : > { %v1966_v50 = vmul.f32 1.442695, %v1956_v49 }
 0x25e   : > { %v1941_v51 = vpop.xlane.xlu1 %1940 }
 0x25f   : > { %3541 = vpow2.f32 %v1966_v50  ;;  %v1957_v53 = vsub.f32 %v1739_v4, %v1941_v51 }
 0x261   : > { %v1968_v54 = vmul.f32 1.442695, %v1957_v53  ;;  %v2562_v53 = vsel %vm2422_vm5, %v2414_v47, 0 }
 0x262   : > { %v1944_v56 = vpop.xlane.xlu0 %1943 }
 0x263   : > { %v1947_v55 = vpop.xlane.xlu1 %1946  ;;  %3543 = vpow2.f32 %v1968_v54  ;;  %v1958_v59 = vsub.f32 %v1785_v19, %v1944_v56 }
 0x264   : > { %v1959_v57 = vsub.f32 %v1831_v13, %v1947_v55  ;;  %v3538_v60 = vpop.eup %3537 }
 0x265   : > { %v1970_v63 = vmul.f32 1.442695, %v1958_v59  ;;  %v1978_v0 = vsel %vm1929_vm4, %v3538_v60, 0.0  ;;  %v2002_v62 = vpack.c.bf16 %v3538_v60, %v3538_v60 }
 0x266   : > { %v1972_v61 = vmul.f32 1.442695, %v1959_v57  ;;  %1979 = vadd.xlane.f32.xlu0 %v1978_v0  ;;  %v2415_v57 = vld [vmem:[%s4262_s2 + $0x8] sm:$0x3] }
 0x267   : > { %3355 = vmatmul.mubr.msk.bf16.vlgmr.msra.gmra.mxu0 %vm1929_vm4, %v2002_v62 }
 0x268   : > { %3545 = vpow2.f32 %v1972_v61  ;;  %v3540_v2 = vpop.eup %3539  ;;  %3365 = vmatpush3.bf16.msra.mxu0 %v4077_v28  ;;  %3366 = vmatprep.mubr.msk.bf16.mxu0 %vm3632_vm0, %v3631_v1 }
 0x269   : > { %3547 = vpow2.f32 %v1970_v63  ;;  %v1981_v3 = vsel %vm1929_vm4, %v3540_v2, 0.0  ;;  %v2003_v6 = vpack.c.bf16 %v3540_v2, %v3540_v2  ;;  %3376 = vmatprep.subr.bf16.mxu0 %v3631_v1  ;;  %v2608_v2 = vsel %vm2422_vm5, %v2415_v57, 0 }
 0x26a   : > { %1982 = vadd.xlane.f32.xlu1 %v1981_v3  ;;  %v1950_v8 = vpop.xlane.xlu0 %1949 }
 0x26b   : > { %v1953_v7 = vpop.xlane.xlu1 %1952  ;;  %v1960_v10 = vsub.f32 %v1877_v29, %v1950_v8  ;;  %3361 = vmatmul.mubr.msk.bf16.vlgmr.msra.gmra.mxu1 %vm1929_vm4, %v2003_v6  ;;  %v2416_v8 = vld [vmem:[%s4262_s2 + $0xa] sm:$0x3] }
 0x26c   : > { %v1961_v9 = vsub.f32 %v1923_v30, %v1953_v7  ;;  %v3542_v4 = vpop.eup %3541  ;;  %3371 = vmatpush3.bf16.msra.mxu1 %v4080_v34  ;;  %3372 = vmatprep.mubr.msk.bf16.mxu1 %vm3632_vm0, %v3631_v1 }
 0x26d   : > { %v1974_v5 = vmul.f32 1.442695, %v1960_v10  ;;  %v1984_v11 = vsel %vm1929_vm4, %v3542_v4, 0.0  ;;  %v2004_v14 = vpack.c.bf16 %v3542_v4, %v3542_v4  ;;  %3382 = vmatprep.subr.bf16.mxu1 %v3631_v1 }
 0x26e   : > { %v1976_v28 = vmul.f32 1.442695, %v1961_v9  ;;  %1985 = vadd.xlane.f32.xlu0 %v1984_v11 }
 0x26f   : > { %3367 = vmatmul.mubr.msk.bf16.vlgmr.msra.gmra.mxu0 %vm1929_vm4, %v2004_v14 }
 0x270   : > { %3549 = vpow2.f32 %v1976_v28  ;;  %v3544_v15 = vpop.eup %3543  ;;  %3377 = vmatpush3.bf16.msra.mxu0 %v4083_v40  ;;  %3378 = vmatprep.mubr.msk.bf16.mxu0 %vm3632_vm0, %v3631_v1 }
 0x271   : > { %3551 = vpow2.f32 %v1974_v5  ;;  %v1987_v34 = vsel %vm1929_vm4, %v3544_v15, 0.0  ;;  %v2005_v16 = vpack.c.bf16 %v3544_v15, %v3544_v15  ;;  %3388 = vmatprep.subr.bf16.mxu0 %v3631_v1  ;;  %v2654_v5 = vsel %vm2422_vm5, %v2416_v8, 0 }
 0x272   : > { %1988 = vadd.xlane.f32.xlu1 %v1987_v34  ;;  %v2417_v34 = vld [vmem:[%s4262_s2 + $0xc] sm:$0x3] }
 0x273   : > { %3373 = vmatmul.mubr.msk.bf16.vlgmr.msra.gmra.mxu1 %vm1929_vm4, %v2005_v16 }
 0x274   : > { %3383 = vmatpush3.bf16.msra.mxu1 %v4086_v46  ;;  %3384 = vmatprep.mubr.msk.bf16.mxu1 %vm3632_vm0, %v3631_v1 }
 0x275   : > { %v3546_v17 = vpop.eup %3545  ;;  %3394 = vmatprep.subr.bf16.mxu1 %v3631_v1 }
 0x276   : > { %v3548_v18 = vpop.eup %3547  ;;  %v1993_v40 = vsel %vm1929_vm4, %v3546_v17, 0.0  ;;  %v2007_v13 = vpack.c.bf16 %v3546_v17, %v3546_v17 }
 0x277   : > { %1994 = vadd.xlane.f32.xlu1 %v1993_v40  ;;  %v1990_v12 = vsel %vm1929_vm4, %v3548_v18, 0.0  ;;  %v2006_v19 = vpack.c.bf16 %v3548_v18, %v3548_v18 }
 0x278   : > { %1991 = vadd.xlane.f32.xlu0 %v1990_v12 }
 0x279   : > { %3379 = vmatmul.mubr.msk.bf16.vlgmr.msra.gmra.mxu0 %vm1929_vm4, %v2006_v19 }
 0x27a   : > { %3389 = vmatpush3.bf16.msra.mxu0 %v4089_v52  ;;  %3390 = vmatprep.mubr.msk.bf16.mxu0 %vm3632_vm0, %v3631_v1 }
 0x27b   : > { %3400 = vmatprep.subr.bf16.mxu0 %v3631_v1  ;;  %3385 = vmatmul.mubr.msk.bf16.vlgmr.msra.gmra.mxu1 %vm1929_vm4, %v2007_v13  ;;  %v2700_v13 = vsel %vm2422_vm5, %v2417_v34, 0 }
 0x27c   : > { %3395 = vmatpush3.bf16.msra.mxu1 %v4092_v58  ;;  %3396 = vmatprep.mubr.msk.bf16.mxu1 %vm3632_vm0, %v3631_v1  ;;  %v2411_v58 = vld [vmem:[%s4262_s2] sm:$0x3] }
 0x27d   : > { %v3550_v46 = vpop.eup %3549  ;;  %3406 = vmatprep.subr.bf16.mxu1 %v3631_v1  ;;  %v2424_v24 = vsel %vm2422_vm5, %v2411_v58, 0 }
 0x27e   : > { %v3552_v20 = vpop.eup %3551  ;;  %v1999_v21 = vsel %vm1929_vm4, %v3550_v46, 0.0  ;;  %v2009_v23 = vpack.c.bf16 %v3550_v46, %v3550_v46  ;;  %v2418_v46 = vld [vmem:[%s4262_s2 + $0xe] sm:$0x3] }
 0x27f   : > { %2000 = vadd.xlane.f32.xlu1 %v1999_v21  ;;  %v1996_v52 = vsel %vm1929_vm4, %v3552_v20, 0.0  ;;  %v2008_v22 = vpack.c.bf16 %v3552_v20, %v3552_v20  ;;  %v2746_v58 = vsel %vm2422_vm5, %v2418_v46, 0 }
 0x280   : > { %1997 = vadd.xlane.f32.xlu0 %v1996_v52 }
 0x281   : > { %3391 = vmatmul.mubr.msk.bf16.vlgmr.msra.gmra.mxu0 %vm1929_vm4, %v2008_v22 }
 0x282   : > { %3402 = vmatprep.mubr.msk.bf16.mxu0 %vm3632_vm0, %v3631_v1  ;;  %3401 = vmatpush3.bf16.msra.mxu0 %v2424_v24 }
 0x283   : > { %3397 = vmatmul.mubr.msk.bf16.vlgmr.msra.gmra.mxu1 %vm1929_vm4, %v2009_v23  ;;  %3412 = vmatprep.subr.bf16.mxu0 %v3631_v1 }
 0x284   : > { %3408 = vmatprep.mubr.msk.bf16.mxu1 %vm3632_vm0, %v3631_v1  ;;  %3407 = vmatpush3.bf16.msra.mxu1 %v2470_v26 }
 0x285   : > { %3418 = vmatprep.subr.bf16.mxu1 %v3631_v1 }
 0x2ef   : > { %v1980_v27 = vpop.xlane.xlu0 %1979 }
 0x2f0   : > { %3553 = vrcp.f32 %v1980_v27 }
 0x2f3   : > { %v1983_v29 = vpop.xlane.xlu1 %1982 }
 0x2f4   : > { %3555 = vrcp.f32 %v1983_v29 }
 0x2f7   : > { %v1986_v30 = vpop.xlane.xlu0 %1985 }
 0x2f8   : > { %3557 = vrcp.f32 %v1986_v30 }
 0x2fb   : > { %v1989_v31 = vpop.xlane.xlu1 %1988 }
 0x2fc   : > { %3559 = vrcp.f32 %v1989_v31 }
 0x2fd   : > { %v3554_v32 = vpop.eup %3553 }
 0x300   : > { %v1995_v39 = vpop.xlane.xlu1 %1994 }
 0x301   : > { %v1992_v36 = vpop.xlane.xlu0 %1991  ;;  %v3556_v43 = vpop.eup %3555 }
 0x302   : > { %3561 = vrcp.f32 %v1992_v36 }
 0x303   : > { %3563 = vrcp.f32 %v1995_v39 }
 0x305   : > { %v3558_v54 = vpop.eup %3557 }
 0x308   : > { %v2001_v0 = vpop.xlane.xlu1 %2000 }
 0x309   : > { %v1998_v59 = vpop.xlane.xlu0 %1997  ;;  %v3560_v3 = vpop.eup %3559 }
 0x30a   : > { %3565 = vrcp.f32 %v1998_v59 }
 0x30b   : > { %3567 = vrcp.f32 %v2001_v0 }
 0x30f   : > { %v3562_v14 = vpop.eup %3561 }
 0x310   : > { %v3564_v40 = vpop.eup %3563 }
 0x317   : > { %v3566_v25 = vpop.eup %3565 }
 0x318   : > { %v3568_v31 = vpop.eup %3567 }
 0x327   : > { %v2059_v33 = vpop.f32.mrf.mxu0 }
 0x328   : > { %v2395_v37 = vmul.f32 %v3554_v32, %v2059_v33 }
 0x329   : > { %v3356_v38 = vpop.f32.mrf.mxu0 }
 0x32a   : > { %v2403_v41 = vpack.c.bf16 %v2395_v37, %v2395_v37 }
 0x32b   : > { %v2062_v44 = vpop.f32.mrf.mxu0  ;;  %v2105_v45 = vpop.f32.mrf.mxu1 }
 0x32c   : > { %v2396_v48 = vmul.f32 %v3556_v43, %v2105_v45  ;;  %3403 = vmatmul.mubr.msk.bf16.vlgmr.msra.gmra.mxu0 %vm1560_vm2, %v2403_v41 }
 0x32d   : > { %v3357_v49 = vpop.f32.mrf.mxu0  ;;  %v3362_v50 = vpop.f32.mrf.mxu1  ;;  %3413 = vmatpush3.bf16.msra.mxu0 %v2516_v42  ;;  %3414 = vmatprep.mubr.msk.bf16.mxu0 %vm3632_vm0, %v3631_v1 }
 0x32e   : > { %v2404_v51 = vpack.c.bf16 %v2396_v48, %v2396_v48  ;;  %3424 = vmatprep.subr.bf16.mxu0 %v3631_v1 }
 0x32f   : > { %v2108_v55 = vpop.f32.mrf.mxu1  ;;  %v2151_v56 = vpop.f32.mrf.mxu0 }
 0x330   : > { %v2397_v60 = vmul.f32 %v3558_v54, %v2151_v56  ;;  %3409 = vmatmul.mubr.msk.bf16.vlgmr.msra.gmra.mxu1 %vm1560_vm2, %v2404_v51 }
 0x331   : > { %v3363_v61 = vpop.f32.mrf.mxu1  ;;  %v3368_v63 = vpop.f32.mrf.mxu0  ;;  %3419 = vmatpush3.bf16.msra.mxu1 %v2562_v53  ;;  %3420 = vmatprep.mubr.msk.bf16.mxu1 %vm3632_vm0, %v3631_v1 }
 0x332   : > { %v2405_v62 = vpack.c.bf16 %v2397_v60, %v2397_v60  ;;  %3430 = vmatprep.subr.bf16.mxu1 %v3631_v1 }
 0x333   : > { %v2154_v6 = vpop.f32.mrf.mxu0  ;;  %v2197_v7 = vpop.f32.mrf.mxu1 }
 0x334   : > { %v2398_v9 = vmul.f32 %v3560_v3, %v2197_v7  ;;  %3415 = vmatmul.mubr.msk.bf16.vlgmr.msra.gmra.mxu0 %vm1560_vm2, %v2405_v62 }
 0x335   : > { %v3369_v10 = vpop.f32.mrf.mxu0  ;;  %v3374_v4 = vpop.f32.mrf.mxu1  ;;  %3425 = vmatpush3.bf16.msra.mxu0 %v2608_v2  ;;  %3426 = vmatprep.mubr.msk.bf16.mxu0 %vm3632_vm0, %v3631_v1 }
 0x336   : > { %v2406_v28 = vpack.c.bf16 %v2398_v9, %v2398_v9  ;;  %3436 = vmatprep.subr.bf16.mxu0 %v3631_v1 }
 0x337   : > { %v2200_v11 = vpop.f32.mrf.mxu1 }
 0x338   : > { %3421 = vmatmul.mubr.msk.bf16.vlgmr.msra.gmra.mxu1 %vm1560_vm2, %v2406_v28 }
 0x339   : > { %v2243_v15 = vpop.f32.mrf.mxu0  ;;  %v3375_v17 = vpop.f32.mrf.mxu1  ;;  %3431 = vmatpush3.bf16.msra.mxu1 %v2654_v5  ;;  %3432 = vmatprep.mubr.msk.bf16.mxu1 %vm3632_vm0, %v3631_v1 }
 0x33a   : > { %v2399_v16 = vmul.f32 %v3562_v14, %v2243_v15  ;;  %3442 = vmatprep.subr.bf16.mxu1 %v3631_v1 }
 0x33b   : > { %v3380_v18 = vpop.f32.mrf.mxu0  ;;  %v2289_v19 = vpop.f32.mrf.mxu1 }
 0x33c   : > { %v2407_v12 = vpack.c.bf16 %v2399_v16, %v2399_v16  ;;  %v2400_v21 = vmul.f32 %v3564_v40, %v2289_v19 }
 0x33d   : > { %v2246_v20 = vpop.f32.mrf.mxu0  ;;  %v3386_v52 = vpop.f32.mrf.mxu1 }
 0x33e   : > { %3427 = vmatmul.mubr.msk.bf16.vlgmr.msra.gmra.mxu0 %vm1560_vm2, %v2407_v12  ;;  %v2408_v22 = vpack.c.bf16 %v2400_v21, %v2400_v21  ;;  %v2987_v20 = vld [vmem:[%s4263_s3] ss:$0 sm:$0xff] }
 0x33f   : > { %v3381_v23 = vpop.f32.mrf.mxu0  ;;  %3437 = vmatpush3.bf16.msra.mxu0 %v2700_v13  ;;  %3438 = vmatprep.mubr.msk.bf16.mxu0 %vm3632_vm0, %v3631_v1  ;;  %v2292_v24 = vpop.f32.mrf.mxu1 }
 0x340   : > { %3433 = vmatmul.mubr.msk.bf16.vlgmr.msra.gmra.mxu1 %vm1560_vm2, %v2408_v22 }
 0x341   : > { %v2335_v26 = vpop.f32.mrf.mxu0  ;;  %v3387_v29 = vpop.f32.mrf.mxu1  ;;  %3443 = vmatpush3.bf16.msra.mxu1 %v2746_v58  ;;  %3444 = vmatprep.mubr.msk.bf16.mxu1 %vm3632_vm0, %v3631_v1 }
 0x342   : > { %v2401_v27 = vmul.f32 %v3566_v25, %v2335_v26 }
 0x343   : > { %v3392_v30 = vpop.f32.mrf.mxu0  ;;  %v2381_v33 = vpop.f32.mrf.mxu1 }
 0x344   : > { %v2409_v32 = vpack.c.bf16 %v2401_v27, %v2401_v27  ;;  %v2402_v36 = vmul.f32 %v3568_v31, %v2381_v33 }
 0x345   : > { %v2338_v35 = vpop.f32.mrf.mxu0  ;;  %v3398_v37 = vpop.f32.mrf.mxu1 }
 0x346   : > { %3439 = vmatmul.mubr.msk.bf16.vlgmr.msra.gmra.mxu0 %vm1560_vm2, %v2409_v32  ;;  %v2410_v38 = vpack.c.bf16 %v2402_v36, %v2402_v36 }
 0x347   : > { %v3393_v39 = vpop.f32.mrf.mxu0  ;;  %v2384_v41 = vpop.f32.mrf.mxu1 }
 0x348   : > { %3445 = vmatmul.mubr.msk.bf16.vlgmr.msra.gmra.mxu1 %vm1560_vm2, %v2410_v38 }
 0x349   : > { %v3399_v42 = vpop.f32.mrf.mxu1 }
 0x3ec   : > { %v2460_v43 = vpop.f32.mrf.mxu0 }
 0x3ed   : > { %v2788_v61 = vsel %vm304_vm1, %v2460_v43, 0.0 }
 0x3ee   : > { %v3404_v44 = vpop.f32.mrf.mxu0 }
 0x3f0   : > { %v2463_v45 = vpop.f32.mrf.mxu0  ;;  %v2506_v47 = vpop.f32.mrf.mxu1 }
 0x3f1   : > { %v2789_v59 = vsel %vm304_vm1, %v2506_v47, 0.0 }
 0x3f2   : > { %v3405_v1 = vpop.f32.mrf.mxu0  ;;  %v3410_v48 = vpop.f32.mrf.mxu1  ;;  %v2790_v62 = vadd.f32 %v2789_v59, %v2788_v61 }
 0x3f4   : > { %v2509_v49 = vpop.f32.mrf.mxu1  ;;  %v2552_v50 = vpop.f32.mrf.mxu0 }
 0x3f5   : > { %v2791_v63 = vsel %vm304_vm1, %v2552_v50, 0.0 }
 0x3f6   : > { %v3411_v51 = vpop.f32.mrf.mxu1  ;;  %v3416_v53 = vpop.f32.mrf.mxu0  ;;  %v2792_v7 = vadd.f32 %v2791_v63, %v2790_v62 }
 0x3f8   : > { %v2555_v54 = vpop.f32.mrf.mxu0  ;;  %v2598_v55 = vpop.f32.mrf.mxu1 }
 0x3f9   : > { %v2793_v3 = vsel %vm304_vm1, %v2598_v55, 0.0 }
 0x3fa   : > { %v3417_v56 = vpop.f32.mrf.mxu0  ;;  %v3422_v57 = vpop.f32.mrf.mxu1  ;;  %v2794_v4 = vadd.f32 %v2793_v3, %v2792_v7 }
 0x3fc   : > { %v2601_v60 = vpop.f32.mrf.mxu1 }
 0x3fe   : > { %v2644_v0 = vpop.f32.mrf.mxu0  ;;  %v3423_v2 = vpop.f32.mrf.mxu1 }
 0x3ff   : > { %v2795_v9 = vsel %vm304_vm1, %v2644_v0, 0.0 }
 0x400   : > { %v3428_v6 = vpop.f32.mrf.mxu0  ;;  %v2690_v8 = vpop.f32.mrf.mxu1  ;;  %v2796_v14 = vadd.f32 %v2795_v9, %v2794_v4 }
 0x401   : > { %v2797_v5 = vsel %vm304_vm1, %v2690_v8, 0.0 }
 0x402   : > { %v2647_v10 = vpop.f32.mrf.mxu0  ;;  %v3434_v28 = vpop.f32.mrf.mxu1  ;;  %v2798_v16 = vadd.f32 %v2797_v5, %v2796_v14 }
 0x404   : > { %v3429_v11 = vpop.f32.mrf.mxu0  ;;  %v2693_v15 = vpop.f32.mrf.mxu1 }
 0x406   : > { %v2736_v34 = vpop.f32.mrf.mxu0  ;;  %v3435_v18 = vpop.f32.mrf.mxu1 }
 0x407   : > { %v2799_v17 = vsel %vm304_vm1, %v2736_v34, 0.0 }
 0x408   : > { %v3440_v40 = vpop.f32.mrf.mxu0  ;;  %v2800_v12 = vadd.f32 %v2799_v17, %v2798_v16  ;;  %v2782_v19 = vpop.f32.mrf.mxu1 }
 0x409   : > { %v2801_v46 = vsel %vm304_vm1, %v2782_v19, 0.0 }
 0x40a   : > { %v2739_v13 = vpop.f32.mrf.mxu0  ;;  %v2802_v21 = vadd.f32 %v2801_v46, %v2800_v12  ;;  %v3446_v52 = vpop.f32.mrf.mxu1 }
 0x40c   : > { %v3441_v22 = vpop.f32.mrf.mxu0  ;;  %v2810_v23 = vadd.f32 %v2987_v20, %v2802_v21  ;;  %v2785_v58 = vpop.f32.mrf.mxu1 }
 0x40e   : > { %v3447_v24 = vpop.f32.mrf.mxu1  ;;  %2811 = vst.msk [vmem:[%s188_s30] sm:$0xff] %vm304_vm1, %v2810_v23 }
 0x40f   : > { %3582 = shalt.err (!%p3579_p3)
}
 0x410   : > { %s3583_s13 = scalar_lea.hbm %s4222_s8, 128  ;;  %s3587_s22 = scalar_lea.hbm %s4264_s4, 256 }
 0x411   : > { %p3584_p4 = scmp.ne.s32.totalorder %s4222_s8, %s3583_s13  ;;  %p3588_p9 = scmp.lt.s32.totalorder %s4222_s8, %s4264_s4 }
 0x412   : > { %p3589_p10 = scmp.lt.s32.totalorder %s3587_s22, %s3583_s13 }
 0x413   : > { %p3585_p7 = pnand %p3584_p4, %p3697_p5 }
 0x414   : > { %p3590_p11 = por %p3589_p10, %p3588_p9 }
 0x415   : > { %p3586_p8 = pneg %p3585_p7 }
 0x417   : > { %p3591_p12 = pnand %p3590_p11, %p3586_p8 }
 0x419   : > { %3594 = shalt.err (!%p3591_p12)
}
 0x41a   : > { %3448 = dma.vmem_to_hbm [thread:$0]  (%p3697_p5), %s2827_s5, 128, %s4222_s8, %s2813_s9  }
 0x41b PF: > { %p3454_p13 = scmp.ge.s32.totalorder %s3629_s18, 2  ;;  %s2838_s28 = sand.u32 1, %s3617_s15  }
 0x41c   : > { %s2839_s29 = scalar_lea.sflag [#allocation3], %s2838_s28 }
 0x41d   : > { %p3451_p0 = pnand %p3454_p13, %p3701_p6 }
 0x41f   : > { %p3452_p1 = pneg %p3451_p0 }
 0x421   : > { %3612 = dma.done.wait (%p3452_p1), %s2839_s29, 128  }
 0x422   : > { %3614 = vsyncadd (%p3452_p1), %s2839_s29, 4294967168  ;;  %p14_p2 = scmp.ge.s32.totalorder %s3684_s21, 4   ;;  %s4267_s15 = smov %s3621_s16 }
 0x423   : > { %s4268_s16 = smov %s3625_s17  ;;  %s4269_s17 = smov %s3695_s24 }
 0x424   : > { %s4270_s18 = smov %s3684_s21  ;;  %16 = sbr.rel (!%p14_p2) target bundleno = 3 (0x3), region = 71 }
 0x429   :  { %2844 = vsyncpa [#allocation3], 1 }
 0x42a   :  { %2846 = vsyncpa [#allocation3 + $0x1], 1 }

</bundles_post_ra>
